<compile_context>
chip_gen: v6e
topology: v6e:2x2x1
jax: 0.10.0
libtpu: 0.0.40
codegen_flags: <defaults>
</compile_context>

<pallas_src>
import math

import jax
import jax.numpy as jnp
import numpy as np
from jax.experimental import pallas as pl
from jax.experimental.pallas import tpu as pltpu


def q2_rollout_kernel(x_ref, h0_ref, c0_ref,
                      w1a_ref, b1a_ref, w1b_ref, b1b_ref,
                      wih_ref, whh_ref, blstm_ref,
                      w3a_ref, b3a_ref, wsc_ref, bsc_ref,
                      values_ref, h_ref, c_ref):
    f32 = jnp.float32
    t = pl.program_id(1)                       # recurrent ("arbitrary") axis
    LH = h_ref.shape[-1]

    # t == 0: load the caller-provided recurrent state for this env group.
    @pl.when(t == 0)
    def _():
        h_ref[...] = h0_ref[...]
        c_ref[...] = c0_ref[...]

    # ---- self.linears (MLP1) on this step's action features ----
    x = x_ref[...][0]                          # [Bg, D_pad]
    z = jnp.maximum(
        jnp.dot(x, w1a_ref[...], preferred_element_type=f32) + b1a_ref[...],
        0.0)
    emb = jnp.dot(z, w1b_ref[...], preferred_element_type=f32) + b1b_ref[...]

    # ---- self.lstm_cell2 (nn.LSTMCell) ----
    h = h_ref[...]
    c = c_ref[...]
    gates = (jnp.dot(emb, wih_ref[...], preferred_element_type=f32)
             + jnp.dot(h, whh_ref[...], preferred_element_type=f32)
             + blstm_ref[...])
    i_g = jax.nn.sigmoid(gates[:, 0 * LH:1 * LH])
    f_g = jax.nn.sigmoid(gates[:, 1 * LH:2 * LH])
    g_g = jnp.tanh(gates[:, 2 * LH:3 * LH])
    o_g = jax.nn.sigmoid(gates[:, 3 * LH:4 * LH])
    c_new = f_g * c + i_g * g_g
    h_new = o_g * jnp.tanh(c_new)
    h_ref[...] = h_new                         # carried state (resident block)
    c_ref[...] = c_new

    # ---- linears3 first layer, then folded (w3b @ r_emb.T) / sqrt(E) ----
    z3 = jnp.maximum(
        jnp.dot(h_new, w3a_ref[...], preferred_element_type=f32) + b3a_ref[...],
        0.0)
    vals = jnp.dot(z3, wsc_ref[...], preferred_element_type=f32) + bsc_ref[...]
    values_ref[...] = vals[None, :, :]         # lane-dense [1, Bg, R_pad] store


def _round_up(x, m):
    return -(-x // m) * m


def prepare_params(params, relation_pre_embedding, embed_dim):
    """One-time (per model) folding/padding of parameters.

    - linears2 relation branch depends only on constants -> hoisted and folded,
      together with the last linears3 layer and the 1/sqrt(E) scale, into a
      single score weight/bias whose columns are padded to a 128-lane tile.
    - LSTMCell biases are pre-added; the odd D_in contraction is padded to a
      multiple of 8 sublanes.
    """
    hp = jax.lax.Precision.HIGHEST

    z2 = jnp.maximum(
        jnp.dot(relation_pre_embedding, params["w2a"], precision=hp)
        + params["b2a"], 0.0)
    r_emb = jnp.dot(z2, params["w2b"], precision=hp) + params["b2b"]   # [R, E]
    scale = 1.0 / math.sqrt(embed_dim)
    w_score = jnp.dot(params["w3b"], r_emb.T, precision=hp) * scale    # [H3a, R]
    b_score = jnp.dot(params["b3b"], r_emb.T, precision=hp) * scale    # [1, R]

    R = w_score.shape[-1]
    r_pad = _round_up(R, 128)
    w_score = jnp.pad(w_score, ((0, 0), (0, r_pad - R)))
    b_score = jnp.pad(b_score, ((0, 0), (0, r_pad - R)))

    d_in = params["w1a"].shape[0]
    d_pad = _round_up(d_in, 8)
    w1a = jnp.pad(params["w1a"], ((0, d_pad - d_in), (0, 0)))

    return {
        "w1a": w1a, "b1a": params["b1a"],
        "w1b": params["w1b"], "b1b": params["b1b"],
        "w_ih": params["wih"], "w_hh": params["whh"],
        "b_lstm": params["bih"] + params["bhh"],
        "w3a": params["w3a"], "b3a": params["b3a"],
        "w_score": w_score, "b_score": b_score,
        "d_in": d_in, "d_pad": d_pad,
        "num_relations": R, "r_pad": r_pad,
    }


def q2_rollout_pallas(pre_emb_seq, h0, c0, p, *, num_env_groups=1):
    """Runs T recurrent Q2 forward steps in one fused pallas_call.

    pre_emb_seq: [T, B, D_in] per-step action features (embed_actions'
      gather/concat, vectorized over the whole rollout).
    Returns (values [T, B, R], (h_T [B, LH], c_T [B, LH]))."""
    T, B, d_in = pre_emb_seq.shape
    LH = h0.shape[-1]
    R, r_pad, d_pad = p["num_relations"], p["r_pad"], p["d_pad"]
    G = num_env_groups
    assert B % G == 0, "batch must split evenly into env groups"
    Bg = B // G
    assert G == 1 or Bg % 8 == 0, "per-group batch must be a sublane multiple"

    x = jnp.pad(pre_emb_seq.astype(jnp.float32),
                ((0, 0), (0, 0), (0, d_pad - d_in)))

    const_map = lambda g, t: (0, 0)            # weights: fetched once, resident
    weight_names = ["w1a", "b1a", "w1b", "b1b", "w_ih", "w_hh", "b_lstm",
                    "w3a", "b3a", "w_score", "b_score"]
    weight_args = [p[n] for n in weight_names]
    weight_specs = [pl.BlockSpec(p[n].shape, const_map) for n in weight_names]

    in_specs = (
        [pl.BlockSpec((1, Bg, d_pad), lambda g, t: (t, g, 0)),   # x (streamed)
         pl.BlockSpec((Bg, LH), lambda g, t: (g, 0)),            # h0
         pl.BlockSpec((Bg, LH), lambda g, t: (g, 0))]            # c0
        + weight_specs)

    out_shape = (jax.ShapeDtypeStruct((T, B, r_pad), jnp.float32),
                 jax.ShapeDtypeStruct((B, LH), jnp.float32),
                 jax.ShapeDtypeStruct((B, LH), jnp.float32))
    out_specs = (pl.BlockSpec((1, Bg, r_pad), lambda g, t: (t, g, 0)),
                 pl.BlockSpec((Bg, LH), lambda g, t: (g, 0)),     # carried h
                 pl.BlockSpec((Bg, LH), lambda g, t: (g, 0)))     # carried c

    values_p, h_new, c_new = pl.pallas_call(
        q2_rollout_kernel,
        grid=(G, T),
        in_specs=in_specs,
        out_shape=out_shape,
        out_specs=out_specs,
        compiler_params=pltpu.CompilerParams(
            dimension_semantics=("parallel", "arbitrary")),
    )(x, h0, c0, *weight_args)
    return values_p[..., :R], (h_new, c_new)


def q2_forward_pallas(pre_emb, h, c, p):
    """Single-step forward with the exact semantics of Q2.forward."""
    values, hc = q2_rollout_pallas(pre_emb[None], h, c, p, num_env_groups=1)
    return values[0], hc


def init_linear(key, d_in, d_out, scale=0.1):
    kw, kb = jax.random.split(key)
    w = jax.random.normal(kw, (d_in, d_out), jnp.float32) * scale
    b = jax.random.normal(kb, (1, d_out), jnp.float32) * scale
    return w, b


if __name__ == "__main__":
    key = jax.random.PRNGKey(0)

    # Small synthetic configuration consistent with Q2.__init__.
    T = 12                     # RL rollout steps fused into one pallas_call
    B = 16                     # vectorized environments (full sublane tiles)
    G = 2                      # env groups -> "parallel" grid axis (v7x 2 TCs)
    node_dim = 16              # node_pre_embedding feature dim
    rel_dim = 16               # relation_pre_embedding feature dim (D_in2)
    num_nodes = 10
    R = 8                      # relation_num
    D_in = 2 * node_dim + 1    # cat(node[a0], node[a1], step)
    H1 = [32, 32]              # q2_hidden_dims1
    H2 = [32, 32]              # q2_hidden_dims2
    H3 = [32, 32]              # q2_hidden_dims3 (last must equal H2[-1])
    LH = 32                    # lstm_hidden_dim
    E = H2[-1]                 # embed_dim
    delayed_reward_step = 10.0

    keys = jax.random.split(key, 16)
    node_pre_embedding = jax.random.normal(keys[0], (num_nodes, node_dim), jnp.float32)
    relation_pre_embedding = jax.random.normal(keys[1], (R, rel_dim), jnp.float32)
    actions0 = jax.random.randint(keys[2], (T, B), 0, num_nodes)
    actions1 = jax.random.randint(keys[3], (T, B), 0, num_nodes)
    step_counts = jax.random.randint(keys[4], (T, B), 0, 5).astype(jnp.float32)
    h0 = jax.random.normal(keys[5], (B, LH), jnp.float32) * 0.1
    c0 = jax.random.normal(keys[6], (B, LH), jnp.float32) * 0.1

    params = {}
    params["w1a"], params["b1a"] = init_linear(keys[7], D_in, H1[0])
    params["w1b"], params["b1b"] = init_linear(keys[8], H1[0], H1[1])
    params["w2a"], params["b2a"] = init_linear(keys[9], rel_dim, H2[0])
    params["w2b"], params["b2b"] = init_linear(keys[10], H2[0], H2[1])
    params["w3a"], params["b3a"] = init_linear(keys[11], LH, H3[0])
    params["w3b"], params["b3b"] = init_linear(keys[12], H3[0], H3[1])
    kih, khh, kbi, kbh = jax.random.split(keys[13], 4)
    params["wih"] = jax.random.normal(kih, (H1[-1], 4 * LH), jnp.float32) * 0.1
    params["whh"] = jax.random.normal(khh, (LH, 4 * LH), jnp.float32) * 0.1
    params["bih"] = jax.random.normal(kbi, (1, 4 * LH), jnp.float32) * 0.1
    params["bhh"] = jax.random.normal(kbh, (1, 4 * LH), jnp.float32) * 0.1

    # embed_actions preprocessing for the WHOLE rollout in one vectorized op
    # (gather + concat + step feature), not once per RL step.
    pre_emb_seq = jnp.concatenate(
        [node_pre_embedding[actions0],                        # [T, B, node_dim]
         node_pre_embedding[actions1],                        # [T, B, node_dim]
         (step_counts / delayed_reward_step)[..., None]],     # [T, B, 1]
        axis=-1)                                              # [T, B, D_in]

    # ---- pure-JAX reference: T sequential applications of Q2.forward ----
    hp = jax.lax.Precision.HIGHEST

    def ref_step(x, h, c):
        z = jnp.maximum(jnp.dot(x, params["w1a"], precision=hp) + params["b1a"], 0.0)
        emb = jnp.dot(z, params["w1b"], precision=hp) + params["b1b"]
        gates = (jnp.dot(emb, params["wih"], precision=hp) + params["bih"]
                 + jnp.dot(h, params["whh"], precision=hp) + params["bhh"])
        i_g = jax.nn.sigmoid(gates[:, :LH])
        f_g = jax.nn.sigmoid(gates[:, LH:2 * LH])
        g_g = jnp.tanh(gates[:, 2 * LH:3 * LH])
        o_g = jax.nn.sigmoid(gates[:, 3 * LH:])
        c_n = f_g * c + i_g * g_g
        h_n = o_g * jnp.tanh(c_n)
        z3 = jnp.maximum(jnp.dot(h_n, params["w3a"], precision=hp) + params["b3a"], 0.0)
        a_emb = jnp.dot(z3, params["w3b"], precision=hp) + params["b3b"]
        z2 = jnp.maximum(jnp.dot(relation_pre_embedding, params["w2a"], precision=hp)
                         + params["b2a"], 0.0)
        r_emb = jnp.dot(z2, params["w2b"], precision=hp) + params["b2b"]
        v = jnp.dot(a_emb, r_emb.T, precision=hp) / math.sqrt(E)
        return v, h_n, c_n

    h_r, c_r = h0, c0
    v_ref_steps = []
    for t in range(T):
        v_t, h_r, c_r = ref_step(pre_emb_seq[t], h_r, c_r)
        v_ref_steps.append(v_t)
    v_ref = np.asarray(jnp.stack(v_ref_steps, 0))
    h_ref_np, c_ref_np = np.asarray(h_r), np.asarray(c_r)

    # ---- fused Pallas rollout ----
    packed = prepare_params(params, relation_pre_embedding, E)
    values, (h_new, c_new) = q2_rollout_pallas(
        pre_emb_seq, h0, c0, packed, num_env_groups=G)
    jax.block_until_ready((values, h_new, c_new))

    np.testing.assert_allclose(np.asarray(values), v_ref, rtol=2e-2, atol=3e-3)
    np.testing.assert_allclose(np.asarray(h_new), h_ref_np, rtol=2e-2, atol=3e-3)
    np.testing.assert_allclose(np.asarray(c_new), c_ref_np, rtol=2e-2, atol=3e-3)

    # Single-step API (exact Q2.forward semantics) also goes through the kernel.
    v1, (h1, c1) = q2_forward_pallas(pre_emb_seq[0], h0, c0, packed)
    jax.block_until_ready((v1, h1, c1))
    np.testing.assert_allclose(np.asarray(v1), v_ref[0], rtol=2e-2, atol=3e-3)

    print("KERNEL_OK")
</pallas_src>

<mosaic_0001>
module attributes {stable_mosaic.version = 11 : i64} {
  func.func @q2_rollout_kernel(%arg0: i32, %arg1: i32, %arg2: memref<1x8x40xf32, #tpu.memory_space<vmem>>, %arg3: memref<8x32xf32, #tpu.memory_space<vmem>>, %arg4: memref<8x32xf32, #tpu.memory_space<vmem>>, %arg5: memref<40x32xf32, #tpu.memory_space<vmem>>, %arg6: memref<1x32xf32, #tpu.memory_space<vmem>>, %arg7: memref<32x32xf32, #tpu.memory_space<vmem>>, %arg8: memref<1x32xf32, #tpu.memory_space<vmem>>, %arg9: memref<32x128xf32, #tpu.memory_space<vmem>>, %arg10: memref<32x128xf32, #tpu.memory_space<vmem>>, %arg11: memref<1x128xf32, #tpu.memory_space<vmem>>, %arg12: memref<32x32xf32, #tpu.memory_space<vmem>>, %arg13: memref<1x32xf32, #tpu.memory_space<vmem>>, %arg14: memref<32x128xf32, #tpu.memory_space<vmem>>, %arg15: memref<1x128xf32, #tpu.memory_space<vmem>>, %arg16: memref<1x8x128xf32, #tpu.memory_space<vmem>>, %arg17: memref<8x32xf32, #tpu.memory_space<vmem>>, %arg18: memref<8x32xf32, #tpu.memory_space<vmem>>) attributes {dimension_semantics = [#tpu.dimension_semantics<parallel>, #tpu.dimension_semantics<arbitrary>], iteration_bounds = array<i64: 2, 12>, scalar_prefetch = 0 : i64, scratch_operands = 0 : i64, tpu.core_type = #tpu.core_type<tc>, window_params = [{transform_indices = @transform_0, window_bounds = array<i64: 1, 8, 40>}, {transform_indices = @transform_1, window_bounds = array<i64: 8, 32>}, {transform_indices = @transform_2, window_bounds = array<i64: 8, 32>}, {pipeline_mode = #tpu.pipeline_mode<synchronous>, transform_indices = @transform_3, window_bounds = array<i64: 40, 32>}, {pipeline_mode = #tpu.pipeline_mode<synchronous>, transform_indices = @transform_4, window_bounds = array<i64: 1, 32>}, {pipeline_mode = #tpu.pipeline_mode<synchronous>, transform_indices = @transform_5, window_bounds = array<i64: 32, 32>}, {pipeline_mode = #tpu.pipeline_mode<synchronous>, transform_indices = @transform_6, window_bounds = array<i64: 1, 32>}, {pipeline_mode = #tpu.pipeline_mode<synchronous>, transform_indices = @transform_7, window_bounds = array<i64: 32, 128>}, {pipeline_mode = #tpu.pipeline_mode<synchronous>, transform_indices = @transform_8, window_bounds = array<i64: 32, 128>}, {pipeline_mode = #tpu.pipeline_mode<synchronous>, transform_indices = @transform_9, window_bounds = array<i64: 1, 128>}, {pipeline_mode = #tpu.pipeline_mode<synchronous>, transform_indices = @transform_10, window_bounds = array<i64: 32, 32>}, {pipeline_mode = #tpu.pipeline_mode<synchronous>, transform_indices = @transform_11, window_bounds = array<i64: 1, 32>}, {pipeline_mode = #tpu.pipeline_mode<synchronous>, transform_indices = @transform_12, window_bounds = array<i64: 32, 128>}, {pipeline_mode = #tpu.pipeline_mode<synchronous>, transform_indices = @transform_13, window_bounds = array<i64: 1, 128>}, {transform_indices = @transform_14, window_bounds = array<i64: 1, 8, 128>}, {transform_indices = @transform_15, window_bounds = array<i64: 8, 32>}, {transform_indices = @transform_16, window_bounds = array<i64: 8, 32>}]} {
    %c0_i32 = arith.constant 0 : i32
    %0 = arith.cmpi eq, %arg1, %c0_i32 : i32
    %1 = arith.extui %0 : i1 to i32
    %c0_i32_0 = arith.constant 0 : i32
    %2 = arith.cmpi ne, %1, %c0_i32_0 : i32
    scf.if %2 {
      %c0_46 = arith.constant 0 : index
      %c0_47 = arith.constant 0 : index
      %68 = vector.load %arg3[%c0_46, %c0_47] : memref<8x32xf32, #tpu.memory_space<vmem>>, vector<8x32xf32>
      %c0_48 = arith.constant 0 : index
      %c0_49 = arith.constant 0 : index
      %69 = vector.load %arg17[%c0_48, %c0_49] : memref<8x32xf32, #tpu.memory_space<vmem>>, vector<8x32xf32>
      tpu.vector_store %arg17[%c0_48, %c0_49], %68 {strides = array<i32>} : memref<8x32xf32, #tpu.memory_space<vmem>>, vector<8x32xf32>,
      %c0_50 = arith.constant 0 : index
      %c0_51 = arith.constant 0 : index
      %70 = vector.load %arg4[%c0_50, %c0_51] : memref<8x32xf32, #tpu.memory_space<vmem>>, vector<8x32xf32>
      %c0_52 = arith.constant 0 : index
      %c0_53 = arith.constant 0 : index
      %71 = vector.load %arg18[%c0_52, %c0_53] : memref<8x32xf32, #tpu.memory_space<vmem>>, vector<8x32xf32>
      tpu.vector_store %arg18[%c0_52, %c0_53], %70 {strides = array<i32>} : memref<8x32xf32, #tpu.memory_space<vmem>>, vector<8x32xf32>,
    } else {
    }
    %c0 = arith.constant 0 : index
    %c0_1 = arith.constant 0 : index
    %c0_2 = arith.constant 0 : index
    %3 = vector.load %arg2[%c0, %c0_1, %c0_2] : memref<1x8x40xf32, #tpu.memory_space<vmem>>, vector<1x8x40xf32>
    %4 = vector.shape_cast %3 : vector<1x8x40xf32> to vector<8x40xf32>
    %c0_3 = arith.constant 0 : index
    %c0_4 = arith.constant 0 : index
    %5 = vector.load %arg5[%c0_3, %c0_4] : memref<40x32xf32, #tpu.memory_space<vmem>>, vector<40x32xf32>
    %cst = arith.constant dense<0.000000e+00> : vector<8x32xf32>
    %6 = tpu.matmul %4, %5, %cst {dimension_numbers = #tpu.dot_dimension_numbers<[1], [0], [0], [1], [0, 0, 1, 1], [], []>} : vector<8x40xf32>, vector<40x32xf32>, vector<8x32xf32> -> vector<8x32xf32>
    %c0_5 = arith.constant 0 : index
    %c0_6 = arith.constant 0 : index
    %7 = vector.load %arg6[%c0_5, %c0_6] : memref<1x32xf32, #tpu.memory_space<vmem>>, vector<1x32xf32>
    %8 = vector.broadcast %7 : vector<1x32xf32> to vector<8x32xf32>
    %9 = arith.addf %6, %8 : vector<8x32xf32>
    %cst_7 = arith.constant 0.000000e+00 : f32
    %10 = vector.broadcast %cst_7 : f32 to vector<8x32xf32>
    %11 = arith.maximumf %9, %10 : vector<8x32xf32>
    %c0_8 = arith.constant 0 : index
    %c0_9 = arith.constant 0 : index
    %12 = vector.load %arg7[%c0_8, %c0_9] : memref<32x32xf32, #tpu.memory_space<vmem>>, vector<32x32xf32>
    %cst_10 = arith.constant dense<0.000000e+00> : vector<8x32xf32>
    %13 = tpu.matmul %11, %12, %cst_10 {dimension_numbers = #tpu.dot_dimension_numbers<[1], [0], [0], [1], [0, 0, 1, 1], [], []>} : vector<8x32xf32>, vector<32x32xf32>, vector<8x32xf32> -> vector<8x32xf32>
    %c0_11 = arith.constant 0 : index
    %c0_12 = arith.constant 0 : index
    %14 = vector.load %arg8[%c0_11, %c0_12] : memref<1x32xf32, #tpu.memory_space<vmem>>, vector<1x32xf32>
    %15 = vector.broadcast %14 : vector<1x32xf32> to vector<8x32xf32>
    %16 = arith.addf %13, %15 : vector<8x32xf32>
    %c0_13 = arith.constant 0 : index
    %c0_14 = arith.constant 0 : index
    %17 = vector.load %arg17[%c0_13, %c0_14] : memref<8x32xf32, #tpu.memory_space<vmem>>, vector<8x32xf32>
    %c0_15 = arith.constant 0 : index
    %c0_16 = arith.constant 0 : index
    %18 = vector.load %arg18[%c0_15, %c0_16] : memref<8x32xf32, #tpu.memory_space<vmem>>, vector<8x32xf32>
    %c0_17 = arith.constant 0 : index
    %c0_18 = arith.constant 0 : index
    %19 = vector.load %arg9[%c0_17, %c0_18] : memref<32x128xf32, #tpu.memory_space<vmem>>, vector<32x128xf32>
    %cst_19 = arith.constant dense<0.000000e+00> : vector<8x128xf32>
    %20 = tpu.matmul %16, %19, %cst_19 {dimension_numbers = #tpu.dot_dimension_numbers<[1], [0], [0], [1], [0, 0, 1, 1], [], []>} : vector<8x32xf32>, vector<32x128xf32>, vector<8x128xf32> -> vector<8x128xf32>
    %c0_20 = arith.constant 0 : index
    %c0_21 = arith.constant 0 : index
    %21 = vector.load %arg10[%c0_20, %c0_21] : memref<32x128xf32, #tpu.memory_space<vmem>>, vector<32x128xf32>
    %cst_22 = arith.constant dense<0.000000e+00> : vector<8x128xf32>
    %22 = tpu.matmul %17, %21, %cst_22 {dimension_numbers = #tpu.dot_dimension_numbers<[1], [0], [0], [1], [0, 0, 1, 1], [], []>} : vector<8x32xf32>, vector<32x128xf32>, vector<8x128xf32> -> vector<8x128xf32>
    %23 = arith.addf %20, %22 : vector<8x128xf32>
    %c0_23 = arith.constant 0 : index
    %c0_24 = arith.constant 0 : index
    %24 = vector.load %arg11[%c0_23, %c0_24] : memref<1x128xf32, #tpu.memory_space<vmem>>, vector<1x128xf32>
    %25 = vector.broadcast %24 : vector<1x128xf32> to vector<8x128xf32>
    %26 = arith.addf %23, %25 : vector<8x128xf32>
    %27 = vector.extract_strided_slice %26 {offsets = [0, 0], sizes = [8, 32], strides = [1, 1]} : vector<8x128xf32> to vector<8x32xf32>
    %28 = arith.negf %27 : vector<8x32xf32>
    %29 = math.exp %28 : vector<8x32xf32>
    %cst_25 = arith.constant 1.000000e+00 : f32
    %30 = vector.broadcast %cst_25 : f32 to vector<8x32xf32>
    %31 = arith.addf %30, %29 : vector<8x32xf32>
    %32 = arith.divf %30, %31 : vector<8x32xf32>
    %33 = vector.extract_strided_slice %26 {offsets = [0, 32], sizes = [8, 32], strides = [1, 1]} : vector<8x128xf32> to vector<8x32xf32>
    %34 = arith.negf %33 : vector<8x32xf32>
    %35 = math.exp %34 : vector<8x32xf32>
    %cst_26 = arith.constant 1.000000e+00 : f32
    %36 = vector.broadcast %cst_26 : f32 to vector<8x32xf32>
    %37 = arith.addf %36, %35 : vector<8x32xf32>
    %38 = arith.divf %36, %37 : vector<8x32xf32>
    %39 = vector.extract_strided_slice %26 {offsets = [0, 64], sizes = [8, 32], strides = [1, 1]} : vector<8x128xf32> to vector<8x32xf32>
    %40 = math.tanh %39 : vector<8x32xf32>
    %41 = vector.extract_strided_slice %26 {offsets = [0, 96], sizes = [8, 32], strides = [1, 1]} : vector<8x128xf32> to vector<8x32xf32>
    %42 = arith.negf %41 : vector<8x32xf32>
    %43 = math.exp %42 : vector<8x32xf32>
    %cst_27 = arith.constant 1.000000e+00 : f32
    %44 = vector.broadcast %cst_27 : f32 to vector<8x32xf32>
    %45 = arith.addf %44, %43 : vector<8x32xf32>
    %46 = arith.divf %44, %45 : vector<8x32xf32>
    %47 = arith.mulf %38, %18 : vector<8x32xf32>
    %48 = arith.mulf %32, %40 : vector<8x32xf32>
    %49 = arith.addf %47, %48 : vector<8x32xf32>
    %50 = math.tanh %49 : vector<8x32xf32>
    %51 = arith.mulf %46, %50 : vector<8x32xf32>
    %c0_28 = arith.constant 0 : index
    %c0_29 = arith.constant 0 : index
    %52 = vector.load %arg17[%c0_28, %c0_29] : memref<8x32xf32, #tpu.memory_space<vmem>>, vector<8x32xf32>
    tpu.vector_store %arg17[%c0_28, %c0_29], %51 {strides = array<i32>} : memref<8x32xf32, #tpu.memory_space<vmem>>, vector<8x32xf32>,
    %c0_30 = arith.constant 0 : index
    %c0_31 = arith.constant 0 : index
    %53 = vector.load %arg18[%c0_30, %c0_31] : memref<8x32xf32, #tpu.memory_space<vmem>>, vector<8x32xf32>
    tpu.vector_store %arg18[%c0_30, %c0_31], %49 {strides = array<i32>} : memref<8x32xf32, #tpu.memory_space<vmem>>, vector<8x32xf32>,
    %c0_32 = arith.constant 0 : index
    %c0_33 = arith.constant 0 : index
    %54 = vector.load %arg12[%c0_32, %c0_33] : memref<32x32xf32, #tpu.memory_space<vmem>>, vector<32x32xf32>
    %cst_34 = arith.constant dense<0.000000e+00> : vector<8x32xf32>
    %55 = tpu.matmul %51, %54, %cst_34 {dimension_numbers = #tpu.dot_dimension_numbers<[1], [0], [0], [1], [0, 0, 1, 1], [], []>} : vector<8x32xf32>, vector<32x32xf32>, vector<8x32xf32> -> vector<8x32xf32>
    %c0_35 = arith.constant 0 : index
    %c0_36 = arith.constant 0 : index
    %56 = vector.load %arg13[%c0_35, %c0_36] : memref<1x32xf32, #tpu.memory_space<vmem>>, vector<1x32xf32>
    %57 = vector.broadcast %56 : vector<1x32xf32> to vector<8x32xf32>
    %58 = arith.addf %55, %57 : vector<8x32xf32>
    %cst_37 = arith.constant 0.000000e+00 : f32
    %59 = vector.broadcast %cst_37 : f32 to vector<8x32xf32>
    %60 = arith.maximumf %58, %59 : vector<8x32xf32>
    %c0_38 = arith.constant 0 : index
    %c0_39 = arith.constant 0 : index
    %61 = vector.load %arg14[%c0_38, %c0_39] : memref<32x128xf32, #tpu.memory_space<vmem>>, vector<32x128xf32>
    %cst_40 = arith.constant dense<0.000000e+00> : vector<8x128xf32>
    %62 = tpu.matmul %60, %61, %cst_40 {dimension_numbers = #tpu.dot_dimension_numbers<[1], [0], [0], [1], [0, 0, 1, 1], [], []>} : vector<8x32xf32>, vector<32x128xf32>, vector<8x128xf32> -> vector<8x128xf32>
    %c0_41 = arith.constant 0 : index
    %c0_42 = arith.constant 0 : index
    %63 = vector.load %arg15[%c0_41, %c0_42] : memref<1x128xf32, #tpu.memory_space<vmem>>, vector<1x128xf32>
    %64 = vector.broadcast %63 : vector<1x128xf32> to vector<8x128xf32>
    %65 = arith.addf %62, %64 : vector<8x128xf32>
    %66 = vector.shape_cast %65 : vector<8x128xf32> to vector<1x8x128xf32>
    %c0_43 = arith.constant 0 : index
    %c0_44 = arith.constant 0 : index
    %c0_45 = arith.constant 0 : index
    %67 = vector.load %arg16[%c0_43, %c0_44, %c0_45] : memref<1x8x128xf32, #tpu.memory_space<vmem>>, vector<1x8x128xf32>
    tpu.vector_store %arg16[%c0_43, %c0_44, %c0_45], %66 {strides = array<i32>} : memref<1x8x128xf32, #tpu.memory_space<vmem>>, vector<1x8x128xf32>,
    return
  }
  func.func @transform_0(%arg0: i32, %arg1: i32) -> (i32, i32, i32) {
    %c0_i32 = arith.constant 0 : i32
    %c0_i32_0 = arith.constant 0 : i32
    return %arg1, %arg0, %c0_i32 : i32, i32, i32
  }
  func.func @transform_1(%arg0: i32, %arg1: i32) -> (i32, i32) {
    %c0_i32 = arith.constant 0 : i32
    %c0_i32_0 = arith.constant 0 : i32
    return %arg0, %c0_i32 : i32, i32
  }
  func.func @transform_2(%arg0: i32, %arg1: i32) -> (i32, i32) {
    %c0_i32 = arith.constant 0 : i32
    %c0_i32_0 = arith.constant 0 : i32
    return %arg0, %c0_i32 : i32, i32
  }
  func.func @transform_3(%arg0: i32, %arg1: i32) -> (i32, i32) {
    %c0_i32 = arith.constant 0 : i32
    %c0_i32_0 = arith.constant 0 : i32
    %c0_i32_1 = arith.constant 0 : i32
    return %c0_i32, %c0_i32_0 : i32, i32
  }
  func.func @transform_4(%arg0: i32, %arg1: i32) -> (i32, i32) {
    %c0_i32 = arith.constant 0 : i32
    %c0_i32_0 = arith.constant 0 : i32
    %c0_i32_1 = arith.constant 0 : i32
    return %c0_i32, %c0_i32_0 : i32, i32
  }
  func.func @transform_5(%arg0: i32, %arg1: i32) -> (i32, i32) {
    %c0_i32 = arith.constant 0 : i32
    %c0_i32_0 = arith.constant 0 : i32
    %c0_i32_1 = arith.constant 0 : i32
    return %c0_i32, %c0_i32_0 : i32, i32
  }
  func.func @transform_6(%arg0: i32, %arg1: i32) -> (i32, i32) {
    %c0_i32 = arith.constant 0 : i32
    %c0_i32_0 = arith.constant 0 : i32
    %c0_i32_1 = arith.constant 0 : i32
    return %c0_i32, %c0_i32_0 : i32, i32
  }
  func.func @transform_7(%arg0: i32, %arg1: i32) -> (i32, i32) {
    %c0_i32 = arith.constant 0 : i32
    %c0_i32_0 = arith.constant 0 : i32
    %c0_i32_1 = arith.constant 0 : i32
    return %c0_i32, %c0_i32_0 : i32, i32
  }
  func.func @transform_8(%arg0: i32, %arg1: i32) -> (i32, i32) {
    %c0_i32 = arith.constant 0 : i32
    %c0_i32_0 = arith.constant 0 : i32
    %c0_i32_1 = arith.constant 0 : i32
    return %c0_i32, %c0_i32_0 : i32, i32
  }
  func.func @transform_9(%arg0: i32, %arg1: i32) -> (i32, i32) {
    %c0_i32 = arith.constant 0 : i32
    %c0_i32_0 = arith.constant 0 : i32
    %c0_i32_1 = arith.constant 0 : i32
    return %c0_i32, %c0_i32_0 : i32, i32
  }
  func.func @transform_10(%arg0: i32, %arg1: i32) -> (i32, i32) {
    %c0_i32 = arith.constant 0 : i32
    %c0_i32_0 = arith.constant 0 : i32
    %c0_i32_1 = arith.constant 0 : i32
    return %c0_i32, %c0_i32_0 : i32, i32
  }
  func.func @transform_11(%arg0: i32, %arg1: i32) -> (i32, i32) {
    %c0_i32 = arith.constant 0 : i32
    %c0_i32_0 = arith.constant 0 : i32
    %c0_i32_1 = arith.constant 0 : i32
    return %c0_i32, %c0_i32_0 : i32, i32
  }
  func.func @transform_12(%arg0: i32, %arg1: i32) -> (i32, i32) {
    %c0_i32 = arith.constant 0 : i32
    %c0_i32_0 = arith.constant 0 : i32
    %c0_i32_1 = arith.constant 0 : i32
    return %c0_i32, %c0_i32_0 : i32, i32
  }
  func.func @transform_13(%arg0: i32, %arg1: i32) -> (i32, i32) {
    %c0_i32 = arith.constant 0 : i32
    %c0_i32_0 = arith.constant 0 : i32
    %c0_i32_1 = arith.constant 0 : i32
    return %c0_i32, %c0_i32_0 : i32, i32
  }
  func.func @transform_14(%arg0: i32, %arg1: i32) -> (i32, i32, i32) {
    %c0_i32 = arith.constant 0 : i32
    %c0_i32_0 = arith.constant 0 : i32
    return %arg1, %arg0, %c0_i32 : i32, i32, i32
  }
  func.func @transform_15(%arg0: i32, %arg1: i32) -> (i32, i32) {
    %c0_i32 = arith.constant 0 : i32
    %c0_i32_0 = arith.constant 0 : i32
    return %arg0, %c0_i32 : i32, i32
  }
  func.func @transform_16(%arg0: i32, %arg1: i32) -> (i32, i32) {
    %c0_i32 = arith.constant 0 : i32
    %c0_i32_0 = arith.constant 0 : i32
    return %arg0, %c0_i32 : i32, i32
  }
}

</mosaic_0001>

<bundles_post_ra>
// kernel: tpu_custom_call.1
= control target key start
LH: loop header
LB: loop body
LE: loop exit
PB: predicated region body
PF: predicated region fallthrough
CT: control target
= control target key end

     0   :  { %s2798_s0 = inlined_call_operand.hbm [shape: f32[12,16,40], index: 0, kind: input, shape index: {}]   ;;  %s2799_s1 = inlined_call_operand.hbm [shape: f32[16,32], index: 1, kind: input, shape index: {}]   ;;  %s2800_s2 = inlined_call_operand.hbm [shape: f32[16,32], index: 2, kind: input, shape index: {}]   ;;  %s2801_s3 = inlined_call_operand.vmem [shape: f32[40,32], index: 3, kind: input, shape index: {}]   ;;  %s2802_s4 = inlined_call_operand.vmem [shape: f32[1,32], index: 4, kind: input, shape index: {}]   ;;  %s2803_s5 = inlined_call_operand.vmem [shape: f32[32,32], index: 5, kind: input, shape index: {}]   ;;  %s2804_s6 = inlined_call_operand.vmem [shape: f32[1,32], index: 6, kind: input, shape index: {}]   ;;  %s2805_s7 = inlined_call_operand.vmem [shape: f32[32,128], index: 7, kind: input, shape index: {}]   ;;  %s2806_s8 = inlined_call_operand.hbm [shape: f32[32,128], index: 8, kind: input, shape index: {}]   ;;  %s2807_s9 = inlined_call_operand.vmem [shape: f32[1,128], index: 9, kind: input, shape index: {}]   ;;  %s2808_s10 = inlined_call_operand.hbm [shape: f32[32,32], index: 10, kind: input, shape index: {}]   ;;  %s2809_s11 = inlined_call_operand.vmem [shape: f32[1,32], index: 11, kind: input, shape index: {}]   ;;  %s2810_s12 = inlined_call_operand.hbm [shape: f32[32,128], index: 12, kind: input, shape index: {}]   ;;  %s2811_s13 = inlined_call_operand.vmem [shape: f32[1,128], index: 13, kind: input, shape index: {}]   ;;  %s2812_s14 = inlined_call_operand.hbm [shape: f32[12,16,128], index: 14, kind: output, shape index: {0}]   ;;  %s2813_s15 = inlined_call_operand.hbm [shape: f32[16,32], index: 15, kind: output, shape index: {1}]   ;;  %s2814_s16 = inlined_call_operand.hbm [shape: f32[16,32], index: 16, kind: output, shape index: {2}]  }
   0x1   :  { %2855 = sst [smem:[#allocation35_spill]] %s2798_s0 }
   0x2   :  { %2856 = sst [smem:[#allocation36_spill]] %s2799_s1 }
   0x3   :  { %2857 = sst [smem:[#allocation37_spill]] %s2800_s2 }
   0x4   :  { %2858 = sst [smem:[#allocation38_spill]] %s2801_s3 }
   0x5   :  { %2859 = sst [smem:[#allocation39_spill]] %s2802_s4 }
   0x6   :  { %2860 = sst [smem:[#allocation40_spill]] %s2803_s5 }
   0x7   :  { %2861 = sst [smem:[#allocation41_spill]] %s2804_s6 }
   0x8   :  { %2862 = sst [smem:[#allocation42_spill]] %s2805_s7 }
   0x9   :  { %2863 = sst [smem:[#allocation43_spill]] %s2806_s8 }
   0xa   :  { %2864 = sst [smem:[#allocation44_spill]] %s2807_s9 }
   0xb   :  { %2865 = sst [smem:[#allocation45_spill]] %s2808_s10 }
   0xc   :  { %2866 = sst [smem:[#allocation46_spill]] %s2809_s11 }
   0xd   :  { %2867 = sst [smem:[#allocation47_spill]] %s2810_s12 }
   0xe   :  { %2868 = sst [smem:[#allocation48_spill]] %s2811_s13 }
   0xf   :  { %2869 = sst [smem:[#allocation49_spill]] %s2812_s14 }
  0x10   :  { %2870 = sst [smem:[#allocation50_spill]] %s2813_s15 }
  0x11   :  { %2871 = sst [smem:[#allocation51_spill]] %s2814_s16 }
  0x12   :  { %22 = vsyncpa [#allocation3], 0 }
  0x13   :  { %24 = vsyncpa [#allocation3 + $0x1], 0 }
  0x14   :  { %25 = vsyncpa [#allocation6], 0 }
  0x15   :  { %27 = vsyncpa [#allocation6 + $0x1], 0 }
  0x16   :  { %28 = vsyncpa [#allocation9], 0 }
  0x17   :  { %29 = vsyncpa [#allocation12], 0 }
  0x18   :  { %30 = vsyncpa [#allocation4], 0 }
  0x19   :  { %32 = vsyncpa [#allocation4 + $0x1], 0 }
  0x1a   :  { %33 = vsyncpa [#allocation15], 0 }
  0x1b   :  { %35 = vsyncpa [#allocation15 + $0x1], 0  ;;  %s2277_s21 = smov 0   ;;  %s2279_s22 = smov 0  }
  0x1c   :  { %s2281_s23 = smov 0   ;;  %s2283_s24 = smov 0  }
  0x1d   :  { %s2285_s25 = smov 0   ;;  %s2287_s26 = smov 0  }
  0x1e   :  { %s2289_s27 = smov 0   ;;  %s2291_s28 = smov 0  }
  0x1f   :  { %s2293_s29 = smov 0   ;;  %s2295_s30 = smov 0  }
  0x20   :  { %s2297_s0 = smov 0  }
  0x21 LB: > { %2872 = sst [smem:[#allocation23_spill]] %s2138_s22  ;;  %s2333_s17 = sadd.s32 4294967295, %s2174_s0   ;;  %s2174_s0 = sphi %s2297_s0, %s41_s0   ;;  %s2170_s30 = sphi %s2295_s30, %s2959_s30   ;;  %s2166_s29 = sphi %s2293_s29, %s2958_s29   ;;  %s2162_s28 = sphi %s2291_s28, %s2957_s28   ;;  %s2158_s27 = sphi %s2289_s27, %s2956_s27   ;;  %s2154_s26 = sphi %s2287_s26, %s2955_s26   ;;  %s2150_s25 = sphi %s2285_s25, %s2954_s25   ;;  %s2146_s24 = sphi %s2283_s24, %s2953_s24   ;;  %s2142_s23 = sphi %s2281_s23, %s2952_s23   ;;  %s2138_s22 = sphi %s2279_s22, %s2951_s22   ;;  %s2134_s21 = sphi %s2277_s21, %s2949_s21  }
  0x22   : > { %2873 = sst [smem:[#allocation24_spill]] %s2146_s24  ;;  %p1513_p0 = scmp.ge.s32.totalorder %s2174_s0, 1 }
  0x23   : > { %2874 = sst [smem:[#allocation25_spill]] %s2158_s27  ;;  %p2831_p1 = scmp.eq.s32.totalorder %s2333_s17, 0 }
  0x24   : > { %2875 = sst [smem:[#allocation26_spill]] %s2162_s28  ;;  %p449_p2 = scmp.lt.s32.totalorder %s2174_s0, 25 }
  0x25   : > { %2876 = sst [smem:[#allocation27_spill]] %s2333_s17  ;;  %s2176_s19 = smov [#allocation8]  }
  0x26   : > { %p2338_p3 = pnand %p1513_p0, %p449_p2  ;;  %s476_s20 = sshll.u32 %s2176_s19, 4  ;;  %s477_s20 = int_to_ptr.vmem [resolvable:$true] %s476_s20 }
  0x27   : > { %s1835_s13 = scalar_lea.vmem %s477_s20, 512  ;;  %p1843_p10 = scmp.lt.s32.totalorder %s477_s20, %s477_s20 }
  0x28   : > { %p1680_p4 = pneg %p2338_p3  ;;  %p1836_p7 = scmp.ne.s32.totalorder %s477_s20, %s1835_s13 }
  0x29   : > { %p1844_p11 = scmp.lt.s32.totalorder %s1835_s13, %s1835_s13 }
  0x2a   : > { %p2346_p5 = pnand %p1680_p4, %p2831_p1 }
  0x2b   : > { %p1845_p12 = por %p1844_p11, %p1843_p10 }
  0x2c   : > { %p2834_p6 = pneg %p2346_p5 }
  0x2e   : > { %p1838_p8 = pnand %p1836_p7, %p2834_p6 }
  0x30   : > { %p1839_p9 = pneg %p1838_p8 }
  0x32   : > { %p1846_p13 = pnand %p1845_p12, %p1839_p9 }
  0x34   : > { %1849 = shalt.err (!%p1846_p13)
}
  0x35   : > { %s2820_s19 = smov 128   ;;  %s2822_s13 = smov 8  }
  0x36   : > { %s2879_s8 = sld [smem:[#allocation43_spill]]  ;;  %s2819_s11 = sadd.s32 4294967294, %s2174_s0  }
  0x37   : > { %p2832_p0 = scmp.eq.s32.totalorder %s2174_s0, 0  ;;  %p95_p2 = scmp.ne.s32.totalorder %s2142_s23, %s2138_s22 }
  0x38   : > { %p101_p4 = scmp.ne.s32.totalorder %s2138_s22, %s2134_s21  ;;  %p2830_p7 = scmp.eq.s32.totalorder %s2333_s17, 23 }
  0x39   : > { %p2373_p8 = por %p95_p2, %p2832_p0  ;;  %p2379_p9 = scmp.eq.s32.totalorder %s2819_s11, 23 }
  0x3a   : > { %p2385_p10 = por %p101_p4, %p2831_p1  ;;  %p2391_p11 = por %p2830_p7, %p95_p2 }
  0x3b   : > { %p2397_p12 = por %p2379_p9, %p101_p4  ;;  %p2833_p13 = scmp.lt.s32.totalorder %s2174_s0, 24 }
  0x3c   : > { %1683 = dma.hbm_to_vmem [thread:$0]  (!%p2346_p5), %s2879_s8, 512, %s477_s20, [#allocation9], %s2820_s19, %s2820_s19, %s2822_s13  }
  0x3d   : > { %s2882_s16 = scalar_select %p2385_p10, 1, 0 }
  0x3e   : > { %s2884_s21 = scalar_select %p2391_p11, 1, 0 }
  0x3f   : > { %2883 = sst [smem:[#allocation28_spill]] %s2882_s16  ;;  %s545_s11 = sand.u32 1, %s2174_s0  }
  0x40   : > { %2885 = sst [smem:[#allocation29_spill]] %s2884_s21  ;;  %s547_s28 = sand.u32 1, %s2142_s23  }
  0x41   : > { %s2886_s20 = scalar_select %p2397_p12, 1, 0 }
  0x42   : > { %s2404_s19 = sshll.u32 %s547_s28, 3  ;;  %s2835_s13 = sshll.u32 %s2170_s30, 7 }
  0x43   : > { %2887 = sst [smem:[#allocation30_spill]] %s2886_s20  ;;  %s549_s7 = scalar_lea.vmem [#allocation5], %s2404_s19 }
  0x44   : > { %s2888_s1 = sld [smem:[#allocation36_spill]]  ;;  %s556_s5 = sshll.u32 %s549_s7, 4  ;;  %s557_s5 = int_to_ptr.vmem [resolvable:$true] %s556_s5 }
  0x45   : > { %p2417_p2 = pnand %p2833_p13, %p2373_p8  ;;  %s2422_s20 = scalar_lea.sflag [#allocation6], %s545_s11 }
  0x46   : > { %s1863_s3 = scalar_lea.vmem %s557_s5, 128  ;;  %s2179_s6 = smov [#allocation5]  }
  0x47   : > { %p2836_p4 = pneg %p2417_p2  ;;  %p1864_p7 = scmp.ne.s32.totalorder %s557_s5, %s1863_s3 }
  0x48   : > { %s1868_s7 = sshll.u32 %s2179_s6, 4  ;;  %s1869_s7 = int_to_ptr.vmem [resolvable:$false] %s1868_s7 }
  0x49   : > { %p1866_p1 = pnand %p1864_p7, %p2836_p4  ;;  %s1870_s8 = scalar_lea.vmem %s1869_s7, 256 }
  0x4a   : > { %s554_s4 = scalar_lea.hbm %s2888_s1, %s2835_s13  ;;  %p1871_p8 = scmp.lt.s32.totalorder %s557_s5, %s1869_s7 }
  0x4b   : > { %p1867_p0 = pneg %p1866_p1  ;;  %p1872_p13 = scmp.lt.s32.totalorder %s1870_s8, %s1863_s3 }
  0x4d   : > { %p1873_p6 = por %p1872_p13, %p1871_p8 }
  0x4f   : > { %p1874_p12 = pnand %p1873_p6, %p1867_p0 }
  0x51   : > { %1877 = shalt.err (!%p1874_p12)
}
  0x52   : > { %1696 = dma.hbm_to_vmem [thread:$0]  (!%p2417_p2), %s554_s4, 128, %s557_s5, %s2422_s20  }
  0x53   : > { %s2180_s9 = smov [#allocation10]   ;;  %s2181_s13 = smov [#allocation11]  }
  0x54   : > { %s492_s11 = sshll.u32 %s2180_s9, 4  ;;  %s508_s28 = sshll.u32 %s2181_s13, 4  ;;  %s493_s11 = int_to_ptr.vmem [resolvable:$true] %s492_s11  ;;  %s509_s28 = int_to_ptr.vmem [resolvable:$true] %s508_s28 }
  0x55   : > { %s1889_s1 = scalar_lea.vmem %s493_s11, 512  ;;  %p2890_p7 = pneg %p2346_p5 }
  0x56   : > { %p1890_p1 = scmp.ne.s32.totalorder %s493_s11, %s1889_s1  ;;  %p1897_p10 = scmp.lt.s32.totalorder %s493_s11, %s493_s11 }
  0x57   : > { %p1898_p13 = scmp.lt.s32.totalorder %s1889_s1, %s1889_s1 }
  0x58   : > { %p1892_p4 = pnand %p1890_p1, %p2890_p7 }
  0x59   : > { %p1899_p6 = por %p1898_p13, %p1897_p10 }
  0x5a   : > { %p1893_p11 = pneg %p1892_p4 }
  0x5c   : > { %p1900_p0 = pnand %p1899_p6, %p1893_p11 }
  0x5e   : > { %1903 = shalt.err (!%p1900_p0)
}
  0x5f   : > { %s2891_s3 = smov 8   ;;  %s2892_s4 = smov 128  }
  0x60   : > { %s2893_s10 = sld [smem:[#allocation45_spill]]  ;;  %s1915_s13 = scalar_lea.vmem %s509_s28, 512 }
  0x61   : > { %p1916_p12 = scmp.ne.s32.totalorder %s509_s28, %s1915_s13  ;;  %p2894_p4 = pmov %p2890_p7 }
  0x62   : > { %p1923_p10 = scmp.lt.s32.totalorder %s509_s28, %s509_s28  ;;  %p1924_p11 = scmp.lt.s32.totalorder %s1915_s13, %s1915_s13 }
  0x63   : > { %p1918_p8 = pnand %p1916_p12, %p2894_p4 }
  0x64   : > { %p1925_p7 = por %p1924_p11, %p1923_p10 }
  0x65   : > { %p1919_p1 = pneg %p1918_p8 }
  0x66   : > { %1686 = dma.hbm_to_vmem [thread:$0]  (!%p2346_p5), %s2893_s10, 512, %s493_s11, [#allocation9], %s2892_s4, %s2892_s4, %s2891_s3  }
  0x67   : > { %p1926_p13 = pnand %p1925_p7, %p1919_p1 }
  0x69   : > { %1929 = shalt.err (!%p1926_p13)
}
  0x6a   : > { %s2895_s12 = sld [smem:[#allocation47_spill]]  ;;  %s50_s14 = sadd.s32 1, %s2166_s29 }
  0x6b   : > { %p51_p6 = scmp.ge.s32.totalorder %s50_s14, 12  ;;  %s62_s8 = sadd.s32 1, %s2154_s26 }
  0x6c   : > { %p69_p0 = scmp.ne.s32.totalorder %s2154_s26, %s2150_s25  ;;  %p75_p12 = scmp.ne.s32.totalorder %s2150_s25, %s2146_s24 }
  0x6d   : > { %s2961_s14 = smov (%p51_p6, %s50_s14), 0  ;;  %s2897_s9 = sadd.s32 1, %s2170_s30 }
  0x6e   : > { %2896 = sst [smem:[#allocation31_spill]] %s2961_s14  ;;  %s2963_s9 = smov (!%p51_p6, %s2897_s9), %s2170_s30 }
  0x6f   : > { %s57_s11 = ssub.s32 %s2166_s29, %s2961_s14  ;;  %p2898_p4 = scmp.eq.s32.totalorder %s2174_s0, 0 }
  0x70   : > { %1689 = dma.hbm_to_vmem [thread:$0]  (!%p2346_p5), %s2895_s12, 512, %s509_s28, [#allocation12], %s2892_s4, %s2892_s4, %s2891_s3  }
  0x71   : > { %p2469_p8 = por %p2898_p4, %p69_p0  ;;  %p55_p5 = scmp.ge.s32.totalorder %s2963_s9, 2 }
  0x72   : > { %p2900_p1 = scmp.eq.s32.totalorder %s2333_s17, 0  ;;  %p2903_p11 = scmp.eq.s32.totalorder %s2333_s17, 23 }
  0x73   : > { %p2487_p13 = por %p2379_p9, %p75_p12  ;;  %s2965_s9 = smov (%p55_p5, %s2963_s9), 0 }
  0x74   : > { %p2475_p10 = por %p2900_p1, %p75_p12  ;;  %p2481_p7 = por %p2903_p11, %p69_p0 }
  0x75   : > { %s2906_s5 = scalar_select %p2487_p13, 1, 0 }
  0x76   : > { %s2901_s3 = scalar_select %p2475_p10, 1, 0 }
  0x77   : > { %s2904_s4 = scalar_select %p2481_p7, 1, 0 }
  0x78   : > { %2902 = sst [smem:[#allocation32_spill]] %s2901_s3  ;;  %s525_s6 = sand.u32 1, %s2154_s26  }
  0x79   : > { %2905 = sst [smem:[#allocation33_spill]] %s2904_s4  ;;  %s1519_s13 = sshll.u32 %s2166_s29, 1 }
  0x7a   : > { %2907 = sst [smem:[#allocation34_spill]] %s2906_s5  ;;  %s58_s1 = ssub.s32 %s2170_s30, %s2965_s9 }
  0x7b   : > { %s59_s7 = sor.u32 %s58_s1, %s57_s11  ;;  %p86_p6 = scmp.eq.s32.totalorder %s58_s1, 0 }
  0x7c   : > { %p60_p0 = scmp.eq.s32.totalorder %s59_s7, 0  ;;  %s1518_s10 = sshll.u32 %s525_s6, 3 }
  0x7d   : > { %s2908_s12 = sadd.s32 1, %s2142_s23  ;;  %s534_s5 = sadd.s32 %s2170_s30, %s1519_s13 }
  0x7e   : > { %s2500_s15 = scalar_select %p86_p6, %s2142_s23, %s2908_s12  }
  0x7f   : > { %s2503_s14 = scalar_select %p60_p0, %s2154_s26, %s62_s8  }
  0x80   : > { %s1520_s24 = sshll.u32 %s534_s5, 7  ;;  %s529_s4 = scalar_lea.vmem [#allocation2], %s1518_s10 }
  0x81   : > { %s538_s27 = sshll.u32 %s529_s4, 4  ;;  %s2909_s17 = sld [smem:[#allocation35_spill]]  ;;  %s539_s27 = int_to_ptr.vmem [resolvable:$true] %s538_s27 }
  0x82   : > { %p2910_p9 = scmp.lt.s32.totalorder %s2174_s0, 24  ;;  %s567_s12 = scalar_lea.vmem [#allocation7], %s2404_s19 }
  0x83   : > { %s574_s1 = sshll.u32 %s567_s12, 4  ;;  %s2912_s8 = sshll.u32 %s2170_s30, 7  ;;  %s2525_s1 = int_to_ptr.vmem [resolvable:$true] %s574_s1 }
  0x84   : > { %p2513_p12 = pnand %p2910_p9, %p2469_p8  ;;  %s2913_s2 = sld [smem:[#allocation37_spill]] }
  0x85   : > { %s526_s22 = scalar_lea.sflag [#allocation3], %s525_s6 }
  0x86   : > { %p1932_p4 = pneg %p2513_p12 }
  0x87   : > { %s536_s3 = scalar_lea.hbm %s2909_s17, %s1520_s24  ;;  %s1943_s24 = scalar_lea.vmem %s539_s27, 128 }
  0x88   : > { %p1944_p5 = scmp.ne.s32.totalorder %s539_s27, %s1943_s24  ;;  %s2182_s17 = smov [#allocation2]  }
  0x89   : > { %s1948_s16 = sshll.u32 %s2182_s17, 4  ;;  %s1949_s16 = int_to_ptr.vmem [resolvable:$false] %s1948_s16 }
  0x8a   : > { %s2523_s10 = scalar_lea.hbm %s2913_s2, %s2912_s8  ;;  %p1946_p8 = pnand %p1944_p5, %p1932_p4 }
  0x8b   : > { %s1950_s19 = scalar_lea.vmem %s1949_s16, 256  ;;  %p1951_p11 = scmp.lt.s32.totalorder %s539_s27, %s1949_s16 }
  0x8c   : > { %p1947_p1 = pneg %p1946_p8  ;;  %p1952_p6 = scmp.lt.s32.totalorder %s1950_s19, %s1943_s24 }
  0x8e   : > { %p1953_p0 = por %p1952_p6, %p1951_p11 }
  0x90   : > { %p1954_p9 = pnand %p1953_p0, %p1947_p1 }
  0x92   : > { %1957 = shalt.err (!%p1954_p9)
}
  0x93   : > { %1693 = dma.hbm_to_vmem [thread:$0]  (!%p2513_p12), %s536_s3, 128, %s539_s27, %s526_s22  }
  0x94   : > { %s1971_s28 = scalar_lea.vmem %s2525_s1, 128  ;;  %p2914_p4 = pneg %p2417_p2 }
  0x95   : > { %p1972_p13 = scmp.ne.s32.totalorder %s2525_s1, %s1971_s28  ;;  %s2183_s4 = smov [#allocation7]  }
  0x96   : > { %s1976_s5 = sshll.u32 %s2183_s4, 4  ;;  %s1977_s5 = int_to_ptr.vmem [resolvable:$false] %s1976_s5 }
  0x97   : > { %p1974_p5 = pnand %p1972_p13, %p2914_p4  ;;  %s1978_s6 = scalar_lea.vmem %s1977_s5, 256 }
  0x98   : > { %p1979_p11 = scmp.lt.s32.totalorder %s2525_s1, %s1977_s5  ;;  %p1980_p1 = scmp.lt.s32.totalorder %s1978_s6, %s1971_s28 }
  0x99   : > { %p1975_p8 = pneg %p1974_p5 }
  0x9a   : > { %p1981_p6 = por %p1980_p1, %p1979_p11 }
  0x9c   : > { %p1982_p0 = pnand %p1981_p6, %p1975_p8 }
  0x9e   : > { %1985 = shalt.err (!%p1982_p0)
}
  0x9f   : > { %1699 = dma.hbm_to_vmem [thread:$0]  (!%p2417_p2), %s2523_s10, 128, %s2525_s1, %s2422_s20  }
  0xa0   : > { %583 = sbr.rel (%p2338_p3) target bundleno = 1703 (0x6a7), region = 76  ;;  %s2545_s3 = sand.u32 (!%p2338_p3), 1, %s2150_s25  }
  0xa1   : > { %s1526_s11 = sshll.u32 (!%p2338_p3), %s2545_s3, 3  ;;  %s586_s12 = scalar_lea.sflag (!%p2338_p3), [#allocation3], %s2545_s3 }
  0xa2   : > { %s2549_s8 = scalar_lea.vmem (!%p2338_p3), [#allocation2], %s1526_s11 }
  0xa5   : > { %2109 = dma.done.wait (%p2475_p10), %s586_s12, 128  }
  0xa6   : > { %2111 = vsyncadd (%p2475_p10), %s586_s12, 4294967168  ;;  %s2916_s21 = sld [smem:[#allocation27_spill]] }
  0xa7   : > { %s2917_s20 = sld [smem:[#allocation23_spill]] }
  0xa8   : > { %s2918_s18 = sld [smem:[#allocation28_spill]] }
  0xac   : > { %s594_s1 = sand.u32 1, %s2916_s21  }
  0xad   : > { %s596_s7 = sand.u32 1, %s2917_s20   ;;  %s595_s10 = scalar_lea.sflag [#allocation6], %s594_s1 }
  0xae   : > { %s1527_s13 = sshll.u32 %s596_s7, 3  ;;  %p2919_p3 = scmp.ne.s32.totalorder %s2918_s18, 0 }
  0xaf   : > { %s598_s22 = scalar_lea.vmem [#allocation5], %s1527_s13 }
  0xb0   : > { %2113 = dma.done.wait (%p2919_p3), %s595_s10, 256  }
  0xb1   : > { %2115 = vsyncadd (%p2919_p3), %s595_s10, 4294967040  ;;  %s607_s24 = scalar_lea.vmem [#allocation7], %s1527_s13  ;;  %p2920_p2 = scmp.eq.s32.totalorder %s2916_s21, 0 }
  0xb3   : > { %2117 = dma.done.wait (%p2920_p2), [#allocation9], 1024   ;;  %p2921_p10 = pmov %p2920_p2 }
  0xb4   : > { %p2922_p13 = pmov %p2920_p2 }
  0xb5   : > { %2119 = vsyncadd (%p2921_p10), [#allocation9], 4294966272 }
  0xb6   : > { %2121 = dma.done.wait (%p2922_p13), [#allocation12], 512   ;;  %p2923_p12 = pmov %p2920_p2 }
  0xb7   : > { %s2571_s17 = scalar_lea.vmem [#allocation13], %s1526_s11  ;;  %s2573_s16 = scalar_lea.vmem [#allocation14], %s1527_s13 }
  0xb8   : > { %2123 = vsyncadd (%p2923_p12), [#allocation12], 4294966784  ;;  %s2575_s19 = scalar_lea.vmem [#allocation16], %s1527_s13  ;;  %s2924_s28 = sld [smem:[#allocation25_spill]] }
  0xbe   : > { %p1535_p9 = scmp.ne.s32.totalorder %s2924_s28, 0 }
  0xc0   : > { %691 = sbr.rel (%p1535_p9) target bundleno = 199 (0xc7), region = 104 }
  0xc5   : > { %v692_v0 = vld [vmem:[%s598_s22] sm:$0xff]  ;;  %vm693_vm0 = vcmask 261120   ;;  %v695_v1 = vld [vmem:[%s607_s24] sm:$0xff] }
  0xc6   : > { %694 = vst.msk [vmem:[%s2573_s16] sm:$0xff] %vm693_vm0, %v692_v0  ;;  %696 = vst.msk [vmem:[%s2575_s19] sm:$0xff] %vm693_vm0, %v695_v1 }
  0xc7 PF: > { %s2925_s6 = sld [smem:[#allocation38_spill]]  ;;  %v2184_v3 = vmov 0.0   ;;  %vm2185_vm1 = vmmov 0   ;;  %v697_v9 = vld [vmem:[%s2549_s8] sm:$0xff]  ;;  %vm710_vm2 = vcmask 326656   ;;  %vm796_vm3 = vcmask 261120  }
  0xc8   : > { %1588 = vmatprep.subr.mxu0 %v2184_v3  ;;  %1598 = vmatprep.mubr.msk.f32.mxu0 %vm2185_vm1, %v2184_v3  ;;  %s2926_s20 = sld [smem:[#allocation40_spill]]  ;;  %v879_v20 = vld [vmem:[#allocation8 + $0x18] sm:$0xff]  ;;  %v878_v21 = vld [vmem:[#allocation8 + $0x10] sm:$0xff]  ;;  %v877_v22 = vld [vmem:[#allocation8 + $0x8] sm:$0xff]  ;;  %s2186_s10 = smov 64  }
  0xc9   : > { %1601 = vmatprep.subr.mxu1 %v2184_v3  ;;  %1609 = vmatprep.mubr.msk.f32.mxu1 %vm2185_vm1, %v2184_v3  ;;  %s2927_s18 = sld [smem:[#allocation42_spill]]  ;;  %v876_v23 = vld [vmem:[#allocation8] sm:$0xff]  ;;  %s2187_s22 = smov 32   ;;  %v1075_v50 = vld [vmem:[#allocation10 + $0x18] sm:$0xff]  ;;  %v1074_v51 = vld [vmem:[#allocation10 + $0x10] sm:$0xff] }
  0xca   : > { %s2928_s24 = sld [smem:[#allocation39_spill]]  ;;  %v1073_v52 = vld [vmem:[#allocation10 + $0x8] sm:$0xff]  ;;  %v1072_v53 = vld [vmem:[#allocation10] sm:$0xff]  ;;  %v1159_v55 = vld [vmem:[#allocation11 + $0x18] sm:$0xff]  ;;  %s1280_s21 = sshll.u32 %s2573_s16, 4  ;;  %s1281_s21 = int_to_ptr.vmem [resolvable:$true] %s1280_s21 }
  0xcb   : > { %s2929_s12 = sld [smem:[#allocation41_spill]]  ;;  %v1158_v60 = vld [vmem:[#allocation11 + $0x10] sm:$0xff]  ;;  %v1157_v61 = vld [vmem:[#allocation11 + $0x8] sm:$0xff]  ;;  %v1156_v62 = vld [vmem:[#allocation11] sm:$0xff]  ;;  %s1986_s2 = scalar_lea.vmem %s1281_s21, 128 }
  0xcc   : > { %s2930_s13 = sld [smem:[#allocation44_spill]]  ;;  %p1987_p4 = scmp.ne.s32.totalorder %s1281_s21, %s1986_s2 }
  0xcd   : > { %v702_v2 = vld [vmem:[%s2925_s6 + $0x20] sm:$0xff]  ;;  %v701_v4 = vld [vmem:[%s2925_s6 + $0x18] sm:$0xff]  ;;  %v700_v6 = vld [vmem:[%s2925_s6 + $0x10] sm:$0xff]  ;;  %s2931_s28 = sld [smem:[#allocation26_spill]]  ;;  %s2189_s27 = smov [#allocation14]  }
  0xce   : > { %1589 = vmatpush3.msra.mxu0 %v702_v2  ;;  %v788_v5 = vld [vmem:[%s2926_s20 + $0x18] sm:$0xff]  ;;  %v699_v7 = vld [vmem:[%s2925_s6 + $0x8] sm:$0xff]  ;;  %v698_v8 = vld [vmem:[%s2925_s6] sm:$0xff]  ;;  %s2933_s5 = sld [smem:[#allocation29_spill]]  ;;  %s1990_s8 = sshll.u32 %s2189_s27, 4  ;;  %s1991_s8 = int_to_ptr.vmem [resolvable:$false] %s1990_s8 }
  0xcf   : > { %1590 = vmatprep.subr.mxu0 %v2184_v3  ;;  %1602 = vmatpush3.msra.mxu1 %v788_v5  ;;  %v787_v10 = vld [vmem:[%s2926_s20 + $0x10] sm:$0xff]  ;;  %v786_v11 = vld [vmem:[%s2926_s20 + $0x8] sm:$0xff]  ;;  %v785_v12 = vld [vmem:[%s2926_s20] sm:$0xff]  ;;  %s2934_s11 = sld [smem:[#allocation46_spill]]  ;;  %p1993_p1 = scmp.lt.s32.totalorder %s1281_s21, %s1991_s8 }
  0xd0   : > { %1591 = vmatpush3.msra.mxu0 %v701_v4  ;;  %1603 = vmatprep.subr.mxu1 %v2184_v3  ;;  %v875_v13 = vld [vmem:[%s2927_s18 + $0x18] sm:$0xff]  ;;  %v874_v14 = vld [vmem:[%s2927_s18 + $0x10] sm:$0xff]  ;;  %v1536_v15 = vld [vmem:[%s2928_s24] ss:$0 sm:$0xff]  ;;  %s2188_s24 = smov 96  }
  0xd1   : > { %1592 = vmatprep.subr.mxu0 %v2184_v3  ;;  %1604 = vmatpush3.msra.mxu1 %v787_v10  ;;  %v873_v24 = vld [vmem:[%s2927_s18 + $0x8] sm:$0xff]  ;;  %v872_v26 = vld [vmem:[%s2927_s18] sm:$0xff]  ;;  %v871_v39 = vld [vmem:[%s2575_s19] sm:$0xff] }
  0xd2   : > { %1593 = vmatpush3.msra.mxu0 %v700_v6  ;;  %1605 = vmatprep.subr.mxu1 %v2184_v3  ;;  %v870_v25 = vld [vmem:[%s2573_s16] sm:$0xff] }
  0xd3   : > { %1594 = vmatprep.subr.mxu0 %v2184_v3  ;;  %1606 = vmatpush3.msra.mxu1 %v786_v11  ;;  %v1538_v27 = vld [vmem:[%s2929_s12] ss:$0 sm:$0xff]  ;;  %s2851_s12 = sshll.u32 %s2931_s28, 7 }
  0xd4   : > { %1595 = vmatpush3.msra.mxu0 %v699_v7  ;;  %1607 = vmatprep.subr.mxu1 %v2184_v3  ;;  %v1542_v34 = vld [vmem:[%s2930_s13] ss:$0 sm:$0xff]  ;;  %p2936_p5 = scmp.ne.s32.totalorder %s2933_s5, 0 }
  0xd5   : > { %1596 = vmatprep.subr.mxu0 %v2184_v3  ;;  %1608 = vmatpush3.msra.mxu1 %v785_v12  ;;  %v1544_v63 = vld [vmem:[%s2934_s11] ss:$0 sm:$0xff]  ;;  %s1992_s11 = scalar_lea.vmem %s1991_s8, 256 }
  0xd6   : > { %1597 = vmatpush3.msra.mxu0 %v698_v8  ;;  %1612 = vmatprep.subr.mxu1 %v2184_v3  ;;  %p1988_p8 = pnand %p1987_p4, %p2936_p5  ;;  %p1994_p6 = scmp.lt.s32.totalorder %s1992_s11, %s1986_s2 }
  0xd7   : > { %1599 = vmatmul.mubr.msk.f32.vlgmr.msra.gmra.mxu0 %vm710_vm2, %v697_v9  ;;  %1623 = vmatprep.subr.mxu0 %v2184_v3 }
  0xd8   : > { %1631 = vmatprep.mubr.msk.f32.mxu0 %vm2185_vm1, %v2184_v3  ;;  %1624 = vmatpush3.msra.mxu0 %v875_v13  ;;  %p1989_p11 = pneg %p1988_p8  ;;  %p1995_p0 = por %p1994_p6, %p1993_p1 }
  0xd9   : > { %1625 = vmatprep.subr.mxu0 %v2184_v3 }
  0xda   : > { %1626 = vmatpush3.msra.mxu0 %v874_v14  ;;  %p1996_p3 = pnand %p1995_p0, %p1989_p11 }
  0xdb   : > { %1627 = vmatprep.subr.mxu0 %v2184_v3 }
  0xdc   : > { %1628 = vmatpush3.msra.mxu0 %v873_v24 }
  0xdd   : > { %1629 = vmatprep.subr.mxu0 %v2184_v3 }
  0xde   : > { %1630 = vmatpush3.msra.mxu0 %v872_v26 }
  0xdf   : > { %1645 = vmatprep.subr.mxu0 %v2184_v3 }
 0x197   : > { %v780_v16 = vpop.f32.mrf.mxu0 }
 0x198   : > { %v781_v17 = vadd.f32 %v1536_v15, %v780_v16 }
 0x199   : > { %v1600_v18 = vpop.f32.mrf.mxu0 }
 0x19a   : > { %v784_v19 = vmax.f32 %v781_v17, 0.0 }
 0x19c   : > { %1610 = vmatmul.mubr.msk.f32.vlgmr.msra.gmra.mxu1 %vm796_vm3, %v784_v19 }
 0x19d   : > { %1613 = vmatpush3.msra.mxu1 %v879_v20  ;;  %1620 = vmatprep.mubr.msk.f32.mxu1 %vm2185_vm1, %v2184_v3 }
 0x19e   : > { %1614 = vmatprep.subr.mxu1 %v2184_v3 }
 0x19f   : > { %1615 = vmatpush3.msra.mxu1 %v878_v21 }
 0x1a0   : > { %1616 = vmatprep.subr.mxu1 %v2184_v3 }
 0x1a1   : > { %1617 = vmatpush3.msra.mxu1 %v877_v22 }
 0x1a2   : > { %1618 = vmatprep.subr.mxu1 %v2184_v3 }
 0x1a3   : > { %1619 = vmatpush3.msra.mxu1 %v876_v23 }
 0x1a4   : > { %1621 = vmatmul.mubr.msk.f32.vlgmr.msra.gmra.mxu1 %vm796_vm3, %v870_v25  ;;  %1634 = vmatprep.subr.mxu1 %v2184_v3 }
 0x1a5   : > { %1642 = vmatprep.mubr.msk.f32.mxu1 %vm2185_vm1, %v2184_v3  ;;  %1635 = vmatpush3.msra.mxu1 %v1075_v50 }
 0x1a6   : > { %1636 = vmatprep.subr.mxu1 %v2184_v3 }
 0x1a7   : > { %1637 = vmatpush3.msra.mxu1 %v1074_v51 }
 0x1a8   : > { %1638 = vmatprep.subr.mxu1 %v2184_v3 }
 0x1a9   : > { %1639 = vmatpush3.msra.mxu1 %v1073_v52 }
 0x1aa   : > { %1640 = vmatprep.subr.mxu1 %v2184_v3 }
 0x1ab   : > { %1641 = vmatpush3.msra.mxu1 %v1072_v53 }
 0x25c   : > { %v866_v28 = vpop.f32.mrf.mxu1 }
 0x25d   : > { %v867_v29 = vadd.f32 %v1538_v27, %v866_v28 }
 0x25e   : > { %v1611_v30 = vpop.f32.mrf.mxu1 }
 0x25f   : > { %1632 = vmatmul.mubr.msk.f32.vlgmr.msra.gmra.mxu0 %vm796_vm3, %v867_v29 }
 0x260   : > { %1653 = vmatprep.mubr.msk.f32.mxu0 %vm2185_vm1, %v2184_v3  ;;  %1646 = vmatpush3.msra.mxu0 %v1159_v55 }
 0x261   : > { %1647 = vmatprep.subr.mxu0 %v2184_v3 }
 0x262   : > { %1648 = vmatpush3.msra.mxu0 %v1158_v60 }
 0x263   : > { %1649 = vmatprep.subr.mxu0 %v2184_v3 }
 0x264   : > { %v949_v31 = vpop.f32.mrf.mxu1  ;;  %1650 = vmatpush3.msra.mxu0 %v1157_v61 }
 0x265   : > { %1651 = vmatprep.subr.mxu0 %v2184_v3 }
 0x266   : > { %v1622_v32 = vpop.f32.mrf.mxu1  ;;  %1652 = vmatpush3.msra.mxu0 %v1156_v62 }
 0x31f   : > { %v1022_v33 = vpop.f32.mrf.mxu0 }
 0x320   : > { %v1023_v35 = vadd.f32 %v1022_v33, %v949_v31 }
 0x321   : > { %v1633_v36 = vpop.f32.mrf.mxu0 }
 0x322   : > { %v1033_v37 = vadd.f32 %v1542_v34, %v1023_v35 }
 0x324   : > { %1816 = vtanh.f32 %v1033_v37  ;;  %v1543_v40 = vmul.f32 -1.442695, %v1033_v37 }
 0x326   : > { %1818 = vpow2.f32 %v1543_v40 }
 0x331   : > { %v1817_v38 = vpop.eup %1816 }
 0x332   : > { %1047 = vrot.lane.b32.xlu0 %v1817_v38, %s2186_s10 }
 0x333   : > { %v1819_v41 = vpop.eup %1818 }
 0x334   : > { %v1037_v42 = vadd.f32 1.0, %v1819_v41 }
 0x336   : > { %1042 = vrot.lane.b32.xlu0 %v871_v39, %s2187_s22  ;;  %1820 = vrcp.f32 %v1037_v42 }
 0x343   : > { %v1821_v43 = vpop.eup %1820 }
 0x3a4   : > { %v1048_v44 = vpop.permute.xlu0 %1047 }
 0x3a5   : > { %v1050_v45 = vmul.f32 %v1821_v43, %v1048_v44 }
 0x3a7   : > { %1052 = vrot.lane.b32.xlu1 %v1050_v45, %s2187_s22 }
 0x3a8   : > { %v1043_v46 = vpop.permute.xlu0 %1042 }
 0x3a9   : > { %v1045_v47 = vmul.f32 %v1821_v43, %v1043_v46 }
 0x419   : > { %v1053_v48 = vpop.permute.xlu1 %1052 }
 0x41a   : > { %v1055_v49 = vadd.f32 %v1053_v48, %v1045_v47 }
 0x41c   : > { %1822 = vtanh.f32 %v1055_v49 }
 0x429   : > { %v1823_v54 = vpop.eup %1822 }
 0x42a   : > { %1058 = vrot.lane.b32.xlu1 %v1823_v54, %s2186_s10  ;;  %s2935_s10 = sld [smem:[#allocation50_spill]] }
 0x42e   : > { %1068 = vrot.lane.b32.xlu1 %v1055_v49, %s2188_s24  ;;  %s2694_s24 = scalar_lea.sflag [#allocation15], %s594_s1 }
 0x49c   : > { %v1059_v56 = vpop.permute.xlu1 %1058 }
 0x49d   : > { %v1061_v57 = vmul.f32 %v1821_v43, %v1059_v56 }
 0x49f   : > { %1063 = vrot.lane.b32.xlu0 %v1061_v57, %s2187_s22  ;;  %s1278_s22 = scalar_lea.hbm %s2935_s10, %s2851_s12 }
 0x4a0   : > { %v1069_v58 = vpop.permute.xlu1 %1068 }
 0x4a1   : > { %1071 = vst.msk [vmem:[%s2575_s19] sm:$0xff] %vm796_vm3, %v1069_v58 }
 0x511   : > { %v1064_v59 = vpop.permute.xlu0 %1063 }
 0x512   : > { %1066 = vst.msk [vmem:[%s2573_s16] sm:$0xff] %vm796_vm3, %v1064_v59  ;;  %1643 = vmatmul.mubr.msk.f32.vlgmr.msra.gmra.mxu1 %vm796_vm3, %v1064_v59 }
 0x5d2   : > { %v1151_v0 = vpop.f32.mrf.mxu1 }
 0x5d3   : > { %v1152_v1 = vadd.f32 %v1544_v63, %v1151_v0 }
 0x5d4   : > { %v1644_v2 = vpop.f32.mrf.mxu1 }
 0x5d5   : > { %v1155_v4 = vmax.f32 %v1152_v1, 0.0 }
 0x5d7   : > { %1654 = vmatmul.mubr.msk.f32.vlgmr.msra.gmra.mxu0 %vm796_vm3, %v1155_v4 }
 0x5d8   : > { %1999 = shalt.err (!%p1996_p3)
}
 0x5d9   : > { %s2000_s16 = scalar_lea.hbm %s1278_s22, 128  ;;  %s2004_s7 = scalar_lea.hbm %s2935_s10, 256 }
 0x5da   : > { %p2001_p2 = scmp.ne.s32.totalorder %s1278_s22, %s2000_s16  ;;  %p2005_p12 = scmp.lt.s32.totalorder %s1278_s22, %s2935_s10 }
 0x5db   : > { %p2006_p9 = scmp.lt.s32.totalorder %s2004_s7, %s2000_s16 }
 0x5dc   : > { %p2002_p10 = pnand %p2001_p2, %p2936_p5 }
 0x5dd   : > { %p2007_p4 = por %p2006_p9, %p2005_p12 }
 0x5de   : > { %p2003_p13 = pneg %p2002_p10 }
 0x5e0   : > { %p2008_p8 = pnand %p2007_p4, %p2003_p13 }
 0x5e2   : > { %2011 = shalt.err (!%p2008_p8)
}
 0x5e3   : > { %1675 = dma.vmem_to_hbm [thread:$0]  (%p2936_p5), %s1281_s21, 128, %s1278_s22, %s2694_s24  }
 0x5e4   : > { %s2937_s2 = sshll.u32 %s2931_s28, 7  ;;  %s2938_s11 = sld [smem:[#allocation51_spill]] }
 0x5e5   : > { %s1293_s4 = sshll.u32 %s2575_s19, 4  ;;  %s2190_s16 = smov [#allocation16]   ;;  %s1294_s4 = int_to_ptr.vmem [resolvable:$true] %s1293_s4 }
 0x5e6   : > { %s2012_s12 = scalar_lea.vmem %s1294_s4, 128  ;;  %s2016_s7 = sshll.u32 %s2190_s16, 4  ;;  %s2017_s7 = int_to_ptr.vmem [resolvable:$false] %s2016_s7 }
 0x5e7   : > { %p2013_p11 = scmp.ne.s32.totalorder %s1294_s4, %s2012_s12  ;;  %s2018_s13 = scalar_lea.vmem %s2017_s7, 256 }
 0x5e8   : > { %p2019_p0 = scmp.lt.s32.totalorder %s1294_s4, %s2017_s7  ;;  %p2020_p3 = scmp.lt.s32.totalorder %s2018_s13, %s2012_s12 }
 0x5e9   : > { %p2014_p1 = pnand %p2013_p11, %p2936_p5 }
 0x5ea   : > { %s1291_s1 = scalar_lea.hbm %s2938_s11, %s2937_s2  ;;  %p2021_p2 = por %p2020_p3, %p2019_p0 }
 0x5eb   : > { %p2015_p6 = pneg %p2014_p1 }
 0x5ed   : > { %p2022_p10 = pnand %p2021_p2, %p2015_p6 }
 0x5ef   : > { %2025 = shalt.err (!%p2022_p10)
}
 0x5f0   : > { %s2026_s21 = scalar_lea.hbm %s1291_s1, 128  ;;  %s2030_s2 = scalar_lea.hbm %s2938_s11, 256 }
 0x5f1   : > { %p2027_p13 = scmp.ne.s32.totalorder %s1291_s1, %s2026_s21  ;;  %p2031_p4 = scmp.lt.s32.totalorder %s1291_s1, %s2938_s11 }
 0x5f2   : > { %p2032_p8 = scmp.lt.s32.totalorder %s2030_s2, %s2026_s21 }
 0x5f3   : > { %p2028_p12 = pnand %p2027_p13, %p2936_p5 }
 0x5f4   : > { %p2033_p11 = por %p2032_p8, %p2031_p4 }
 0x5f5   : > { %p2029_p9 = pneg %p2028_p12 }
 0x5f7   : > { %p2034_p1 = pnand %p2033_p11, %p2029_p9 }
 0x5f9   : > { %2037 = shalt.err (!%p2034_p1)
}
 0x5fa   : > { %s2939_s12 = sld [smem:[#allocation25_spill]]  ;;  %s1267_s2 = sshll.u32 %s2571_s17, 4  ;;  %s1268_s2 = int_to_ptr.vmem [resolvable:$true] %s1267_s2 }
 0x5fb   : > { %1676 = dma.vmem_to_hbm [thread:$0]  (%p2936_p5), %s1294_s4, 128, %s1291_s1, %s2694_s24  }
 0x5fc   : > { %s2941_s27 = sld [smem:[#allocation48_spill]]  ;;  %s1242_s11 = scalar_lea.sflag [#allocation4], %s2545_s3 }
 0x5fd   : > { %s2942_s6 = sld [smem:[#allocation49_spill]]  ;;  %s2038_s24 = scalar_lea.vmem %s1268_s2, 128 }
 0x5fe   : > { %p2039_p5 = scmp.ne.s32.totalorder %s1268_s2, %s2038_s24 }
 0x600   : > { %s1551_s7 = sshll.u32 %s2939_s12, 1  ;;  %p2040_p6 = pnand %p2039_p5, %p2481_p7 }
 0x601   : > { %s1263_s13 = sadd.s32 %s2931_s28, %s1551_s7  ;;  %s2191_s28 = smov [#allocation13]  }
 0x602   : > { %v1546_v3 = vld [vmem:[%s2941_s27] ss:$0 sm:$0xff]  ;;  %s1552_s21 = sshll.u32 %s1263_s13, 7  ;;  %p2041_p0 = pneg %p2040_p6 }
 0x603   : > { %s2737_s10 = scalar_lea.hbm %s2942_s6, %s1552_s21  ;;  %s2042_s1 = sshll.u32 %s2191_s28, 4  ;;  %s2043_s1 = int_to_ptr.vmem [resolvable:$false] %s2042_s1 }
 0x604   : > { %s2044_s4 = scalar_lea.vmem %s2043_s1, 256  ;;  %p2045_p3 = scmp.lt.s32.totalorder %s1268_s2, %s2043_s1 }
 0x605   : > { %p2046_p2 = scmp.lt.s32.totalorder %s2044_s4, %s2038_s24 }
 0x607   : > { %p2047_p10 = por %p2046_p2, %p2045_p3 }
 0x609   : > { %p2048_p13 = pnand %p2047_p10, %p2041_p0 }
 0x697   : > { %v1236_v5 = vpop.f32.mrf.mxu0 }
 0x698   : > { %v1237_v6 = vadd.f32 %v1546_v3, %v1236_v5 }
 0x699   : > { %v1655_v7 = vpop.f32.mrf.mxu0 }
 0x69a   : > { %1240 = vst [vmem:[%s2571_s17] sm:$0xff] %v1237_v6 }
 0x69b   : > { %2051 = shalt.err (!%p2048_p13)
}
 0x69c   : > { %s2052_s17 = scalar_lea.hbm %s2737_s10, 128  ;;  %s2056_s7 = scalar_lea.hbm %s2942_s6, 3072 }
 0x69d   : > { %p2053_p12 = scmp.ne.s32.totalorder %s2737_s10, %s2052_s17  ;;  %p2057_p8 = scmp.lt.s32.totalorder %s2737_s10, %s2942_s6 }
 0x69e   : > { %p2058_p11 = scmp.lt.s32.totalorder %s2056_s7, %s2052_s17 }
 0x69f   : > { %p2054_p9 = pnand %p2053_p12, %p2481_p7 }
 0x6a0   : > { %p2059_p1 = por %p2058_p11, %p2057_p8 }
 0x6a1   : > { %p2055_p4 = pneg %p2054_p9 }
 0x6a3   : > { %p2060_p5 = pnand %p2059_p1, %p2055_p4 }
 0x6a5   : > { %2063 = shalt.err (!%p2060_p5)
}
 0x6a6   : > { %1674 = dma.vmem_to_hbm [thread:$0]  (%p2481_p7), %s1268_s2, 128, %s2737_s10, %s1242_s11  }
 0x6a7 PF: > { %s2943_s22 = sld [smem:[#allocation24_spill]]  ;;  %p1717_p6 = scmp.ge.s32.totalorder %s2174_s0, 2 }
 0x6a8   : > { %s2944_s27 = sld [smem:[#allocation34_spill]] }
 0x6ad   : > { %s1305_s21 = sand.u32 1, %s2943_s22  }
 0x6ae   : > { %p2945_p0 = scmp.ne.s32.totalorder %s2944_s27, 0  ;;  %s1306_s8 = scalar_lea.sflag [#allocation4], %s1305_s21 }
 0x6b0   : > { %p1701_p3 = pnand %p1717_p6, %p2945_p0 }
 0x6b2   : > { %p1702_p2 = pneg %p1701_p3 }
 0x6b4   : > { %2125 = dma.done.wait (%p1702_p2), %s1306_s8, 128  }
 0x6b5   : > { %2127 = vsyncadd (%p1702_p2), %s1306_s8, 4294967168  ;;  %s2946_s5 = sadd.s32 4294967294, %s2174_s0   ;;  %s2947_s24 = sld [smem:[#allocation30_spill]] }
 0x6b6   : > { %s1314_s28 = sand.u32 1, %s2946_s5  }
 0x6b7   : > { %s1315_s10 = scalar_lea.sflag [#allocation15], %s1314_s28 }
 0x6bb   : > { %p2948_p10 = scmp.ne.s32.totalorder %s2947_s24, 0 }
 0x6bd   : > { %p1704_p13 = pnand %p1717_p6, %p2948_p10 }
 0x6bf   : > { %p1705_p12 = pneg %p1704_p13 }
 0x6c1   : > { %2129 = dma.done.wait (%p1705_p12), %s1315_s10, 256  }
 0x6c2   : > { %2131 = vsyncadd (%p1705_p12), %s1315_s10, 4294967040  ;;  %s41_s0 = sadd.s32 1, %s2174_s0   ;;  %s2949_s21 = sld [smem:[#allocation23_spill]] }
 0x6c3   : > { %p38_p7 = scmp.ge.s32.totalorder %s41_s0, 26   ;;  %s2950_s11 = sld [smem:[#allocation31_spill]] }
 0x6c4   : > { %s2951_s22 = smov %s2142_s23  ;;  %s2952_s23 = smov %s2500_s15 }
 0x6c5   : > { %s2953_s24 = smov %s2150_s25  ;;  %s2954_s25 = smov %s2154_s26 }
 0x6c6   : > { %s2955_s26 = smov %s2503_s14  ;;  %s2956_s27 = smov %s2166_s29 }
 0x6c7   : > { %s2957_s28 = smov %s2170_s30  ;;  %s2959_s30 = smov %s2965_s9 }
 0x6c8   :  { %40 = sbr.rel (!%p38_p7) target bundleno = 33 (0x21), region = 193 }
 0x6c9   : > { %s2958_s29 = smov %s2950_s11 }
 0x6cd   :  { %1329 = vsyncpa [#allocation3], 1 }
 0x6ce   :  { %1331 = vsyncpa [#allocation3 + $0x1], 1 }
 0x6cf   :  { %1332 = vsyncpa [#allocation6], 1 }
 0x6d0   :  { %1334 = vsyncpa [#allocation6 + $0x1], 1 }
 0x6d1   :  { %1335 = vsyncpa [#allocation9], 1 }
 0x6d2   :  { %1336 = vsyncpa [#allocation12], 1 }
 0x6d3   :  { %1337 = vsyncpa [#allocation4], 1 }
 0x6d4   :  { %1339 = vsyncpa [#allocation4 + $0x1], 1 }
 0x6d5   :  { %1340 = vsyncpa [#allocation15], 1 }
 0x6d6   :  { %1342 = vsyncpa [#allocation15 + $0x1], 1 }

</bundles_post_ra>
